<compile_context>
chip_gen: v5e
topology: v5e:2x2
jax: 0.10.0
libtpu: 0.0.40
codegen_flags: <defaults>
</compile_context>

<pallas_src>
import functools

import jax
import jax.numpy as jnp
from jax.experimental import pallas as pl
from jax.experimental.pallas import tpu as pltpu

_MIB = 1 << 20


def _vmem_capacity_bytes():
    try:
        return int(pltpu.get_tpu_info().vmem_capacity_bytes)
    except Exception:
        return 64 * _MIB  # conservative fallback (v7x per-TC VMEM)


def _round_up(x, m):
    return -(-x // m) * m


def _round_down(x, m):
    return (x // m) * m


# ----------------------------- kernels -------------------------------------


def _mlp_kernel(x_ref, w1_ref, w2_ref, p_ref, o_ref):
    """out = PReLU2(PReLU1(x @ W1 + b1) @ W2 + b2) + x  (whole-weight path).

    p_ref rows: 0 = b1, 1 = alpha1, 2 = b2, 3 = alpha2 (rows 4..7 are padding).
    """
    x = x_ref[...]
    x_f32 = x if x.dtype == jnp.float32 else x.astype(jnp.float32)
    mm_dtype = w1_ref.dtype

    p = p_ref[...]
    b1, a1, b2, a2 = p[0:1, :], p[1:2, :], p[2:3, :], p[3:4, :]

    # fc1 on the MXU (f32 accumulate), bias + PReLU in f32.
    h = jnp.dot(x.astype(mm_dtype), w1_ref[...],
                preferred_element_type=jnp.float32) + b1
    h = jnp.where(h >= 0.0, h, a1 * h)

    # fc2 on the MXU, bias + PReLU in f32.
    h = jnp.dot(h.astype(mm_dtype), w2_ref[...],
                preferred_element_type=jnp.float32) + b2
    h = jnp.where(h >= 0.0, h, a2 * h)

    o_ref[...] = (h + x_f32).astype(o_ref.dtype)


def _mlp_stream_kernel(x_ref, w1_ref, w2_ref, p_ref, o_ref, acc_ref, *, n_tile):
    """Weight-streaming path for large P.

    Grid axis 1 tiles the hidden dimension: step n computes
    h_n = PReLU1(x @ W1[:, n] + b1[n]) and accumulates h_n @ W2[n, :] into an
    f32 VMEM scratch; bias2 / PReLU2 / residual are applied on the last step.
    """
    n = pl.program_id(1)
    mm_dtype = w1_ref.dtype

    @pl.when(n == 0)
    def _():
        acc_ref[...] = jnp.zeros_like(acc_ref)

    col0 = pl.multiple_of(n * n_tile, n_tile)
    b1 = p_ref[0:1, pl.ds(col0, n_tile)]
    a1 = p_ref[1:2, pl.ds(col0, n_tile)]

    x = x_ref[...]
    h = jnp.dot(x.astype(mm_dtype), w1_ref[...],
                preferred_element_type=jnp.float32) + b1
    h = jnp.where(h >= 0.0, h, a1 * h)
    acc_ref[...] += jnp.dot(h.astype(mm_dtype), w2_ref[...],
                            preferred_element_type=jnp.float32)

    @pl.when(n == pl.num_programs(1) - 1)
    def _():
        b2 = p_ref[2:3, :]
        a2 = p_ref[3:4, :]
        y = acc_ref[...] + b2
        y = jnp.where(y >= 0.0, y, a2 * y)
        x_f32 = x if x.dtype == jnp.float32 else x.astype(jnp.float32)
        o_ref[...] = (y + x_f32).astype(o_ref.dtype)


# -------------------------- tiling heuristics -------------------------------


def _pick_tiles(B, P, x_itemsize, out_itemsize, mm_itemsize, usable, n_tile):
    """Pick (batch_tile, n_tile_or_None), VMEM- and megacore-aware."""
    resident_w = 2 * P * P * mm_itemsize          # both weights, single-buffered
    params_bytes = 8 * P * 4

    stream = n_tile is not None
    if not stream and resident_w + params_bytes > usable // 2:
        # Whole weights don't comfortably fit VMEM (P ~ 3.2k+ on v7x):
        # stream hidden-dim tiles instead (restores weight-DMA overlap too).
        for cand in (1024, 512, 256, 128):
            if P % cand == 0 and 4 * P * cand * mm_itemsize <= usable // 3:
                n_tile = cand
                stream = True
                break
        # TODO(synk): huge P that is not a multiple of 128 would need padded /
        # masked hidden-dim tiles; we fall through to the whole-weight path.

    if stream:
        # w1/w2 column/row tiles change with n -> double-buffered.
        fixed = 2 * 2 * P * n_tile * mm_itemsize + params_bytes
        per_row = P * (2 * x_itemsize + 2 * out_itemsize + 4 + 8)  # io + acc + slack
    else:
        fixed = resident_w + params_bytes
        per_row = P * (2 * x_itemsize + 2 * out_itemsize + 16)     # io + f32 temps

    max_rows = max((usable - fixed) // per_row, 1)
    tile = min(4096, int(max_rows))

    if B >= 16:
        # Guarantee >= 2 grid steps so both v7x TensorCores get sharded work.
        tile = min(tile, _round_up(-(-B // 2), 8))
    tile = min(tile, _round_up(B, 8))

    if tile >= 512:
        tile = _round_down(tile, 256)   # 256-deep MXU on v6e/v7x
    else:
        tile = _round_down(tile, 8)
    tile = max(tile, 8)
    if B < 8:
        tile = B                        # single full-array block

    return tile, (n_tile if stream else None)


# ------------------------------ wrapper -------------------------------------


def prepare_basic_mlp_params(w1, b1, a1, w2, b2, a2, matmul_dtype=jnp.bfloat16):
    """One-time preprocessing (hoist out of the per-forward path / cache it).

    Transposes PyTorch-style (out, in) weights to (in, out), casts them to the
    MXU dtype, and packs the four per-channel vectors into one sublane-aligned
    (8, P) f32 slab (single DMA instead of four tiny ones).
    """
    P = w1.shape[0]
    w1_t = jnp.asarray(w1, matmul_dtype).T
    w2_t = jnp.asarray(w2, matmul_dtype).T
    params = jnp.zeros((8, P), jnp.float32)
    params = params.at[0].set(jnp.asarray(b1, jnp.float32))
    params = params.at[1].set(jnp.asarray(a1, jnp.float32))
    params = params.at[2].set(jnp.asarray(b2, jnp.float32))
    params = params.at[3].set(jnp.asarray(a2, jnp.float32))
    return w1_t, w2_t, params


def basic_mlp(x, prepared, *, batch_tile=None, n_tile=None):
    """x: (B, P) activations.  prepared: output of prepare_basic_mlp_params."""
    w1_t, w2_t, params = prepared
    B, P = x.shape
    assert w1_t.shape == (P, P) and w2_t.shape == (P, P)

    mm_itemsize = jnp.dtype(w1_t.dtype).itemsize
    x_itemsize = jnp.dtype(x.dtype).itemsize
    out_itemsize = x_itemsize  # output dtype follows x

    vmem_cap = _vmem_capacity_bytes()
    usable = min(vmem_cap - 8 * _MIB, 100 * _MIB)      # tile-sizing budget
    limit_cap = min(vmem_cap - 4 * _MIB, 100 * _MIB)   # vmem_limit ceiling

    auto_tile, n_tile = _pick_tiles(B, P, x_itemsize, out_itemsize,
                                    mm_itemsize, usable, n_tile)
    if batch_tile is None:
        batch_tile = auto_tile

    # Pad the batch so the tile always divides it (no one-giant-step fallback).
    B_pad = _round_up(B, batch_tile)
    x_in = x if B_pad == B else jnp.pad(x, ((0, B_pad - B), (0, 0)))

    if n_tile is None:
        grid = (B_pad // batch_tile,)
        in_specs = [
            pl.BlockSpec((batch_tile, P), lambda i: (i, 0)),
            # Index-constant blocks: single-buffer them (no overlap to gain).
            pl.BlockSpec((P, P), lambda i: (0, 0), pipeline_mode=pl.Buffered(1)),
            pl.BlockSpec((P, P), lambda i: (0, 0), pipeline_mode=pl.Buffered(1)),
            pl.BlockSpec((8, P), lambda i: (0, 0), pipeline_mode=pl.Buffered(1)),
        ]
        out_specs = pl.BlockSpec((batch_tile, P), lambda i: (i, 0))
        scratch_shapes = []
        kernel = _mlp_kernel
        dim_sem = ("parallel",)
        vmem_est = (2 * P * P * mm_itemsize + 8 * P * 4
                    + 2 * batch_tile * P * (x_itemsize + out_itemsize)
                    + 4 * batch_tile * P * 4)          # f32 h / residual / casts
    else:
        assert P % n_tile == 0 and n_tile % 128 == 0
        grid = (B_pad // batch_tile, P // n_tile)
        in_specs = [
            pl.BlockSpec((batch_tile, P), lambda i, n: (i, 0)),
            pl.BlockSpec((P, n_tile), lambda i, n: (0, n)),
            pl.BlockSpec((n_tile, P), lambda i, n: (n, 0)),
            pl.BlockSpec((8, P), lambda i, n: (0, 0), pipeline_mode=pl.Buffered(1)),
        ]
        out_specs = pl.BlockSpec((batch_tile, P), lambda i, n: (i, 0))
        scratch_shapes = [pltpu.VMEM((batch_tile, P), jnp.float32)]
        kernel = functools.partial(_mlp_stream_kernel, n_tile=n_tile)
        dim_sem = ("parallel", "arbitrary")
        vmem_est = (2 * 2 * P * n_tile * mm_itemsize + 8 * P * 4
                    + 2 * batch_tile * P * (x_itemsize + out_itemsize)
                    + batch_tile * P * 4               # f32 accumulator
                    + 3 * batch_tile * n_tile * 4)     # f32 h / casts

    # Always set the scoped-VMEM limit (v5e default is only 16 MiB), clamped to
    # the chip's real capacity minus headroom (v7x has only 64 MiB).
    vmem_limit = int(min(max(vmem_est + 8 * _MIB, 32 * _MIB), limit_cap))

    out = pl.pallas_call(
        kernel,
        out_shape=jax.ShapeDtypeStruct((B_pad, P), x.dtype),
        grid_spec=pltpu.PrefetchScalarGridSpec(
            num_scalar_prefetch=0,
            grid=grid,
            in_specs=in_specs,
            out_specs=out_specs,
            scratch_shapes=scratch_shapes,
        ),
        compiler_params=pltpu.CompilerParams(
            dimension_semantics=dim_sem,
            vmem_limit_bytes=vmem_limit,
        ),
    )(x_in, w1_t, w2_t, params)

    return out if B_pad == B else out[:B]


def basic_mlp_ref(x, w1, b1, a1, w2, b2, a2):
    """Pure-JAX f32 reference matching the PyTorch forward."""
    def prelu(y, a):
        return jnp.where(y >= 0, y, a * y)
    h = prelu(x @ w1.T + b1, a1)
    h = prelu(h @ w2.T + b2, a2)
    return h + x


if __name__ == "__main__":
    B, P = 16, 128  # batch, planes

    key = jax.random.PRNGKey(0)
    kx, kw1, kb1, kw2, kb2 = jax.random.split(key, 5)

    # Deterministic init (PyTorch-Linear-style uniform bound, PReLU alpha=0.25).
    bound = 1.0 / (P ** 0.5)
    x = jax.random.normal(kx, (B, P), dtype=jnp.float32)
    w1 = jax.random.uniform(kw1, (P, P), jnp.float32, -bound, bound)
    b1 = jax.random.uniform(kb1, (P,), jnp.float32, -bound, bound)
    w2 = jax.random.uniform(kw2, (P, P), jnp.float32, -bound, bound)
    b2 = jax.random.uniform(kb2, (P,), jnp.float32, -bound, bound)
    a1 = jnp.full((P,), 0.25, jnp.float32)
    a2 = jnp.full((P,), 0.25, jnp.float32)

    # One-time preprocessing (hoisted out of the forward path).
    prepared = prepare_basic_mlp_params(w1, b1, a1, w2, b2, a2)
    prepared = jax.block_until_ready(prepared)

    out = basic_mlp(x, prepared)
    out = jax.block_until_ready(out)

    ref = basic_mlp_ref(x, w1, b1, a1, w2, b2, a2)
    assert out.shape == (B, P)
    # bf16 matmul inputs with f32 accumulation -> loosened tolerance vs f32 ref.
    assert jnp.allclose(out, ref, atol=2e-2, rtol=2e-2)

    # Sanity-check the weight-streaming (hidden-dim tiled) path as well.
    B2, P2 = 64, 256
    k2 = jax.random.split(key, 8)
    bound2 = 1.0 / (P2 ** 0.5)
    x2 = jax.random.normal(k2[0], (B2, P2), jnp.float32)
    w1b = jax.random.uniform(k2[1], (P2, P2), jnp.float32, -bound2, bound2)
    b1b = jax.random.uniform(k2[2], (P2,), jnp.float32, -bound2, bound2)
    w2b = jax.random.uniform(k2[3], (P2, P2), jnp.float32, -bound2, bound2)
    b2b = jax.random.uniform(k2[4], (P2,), jnp.float32, -bound2, bound2)
    a1b = jnp.full((P2,), 0.25, jnp.float32)
    a2b = jnp.full((P2,), 0.25, jnp.float32)
    prep2 = jax.block_until_ready(
        prepare_basic_mlp_params(w1b, b1b, a1b, w2b, b2b, a2b))
    out2 = jax.block_until_ready(basic_mlp(x2, prep2, n_tile=128))
    ref2 = basic_mlp_ref(x2, w1b, b1b, a1b, w2b, b2b, a2b)
    assert out2.shape == (B2, P2)
    assert jnp.allclose(out2, ref2, atol=3e-2, rtol=3e-2)

    print("KERNEL_OK")
</pallas_src>

<mosaic_0001>
module attributes {stable_mosaic.version = 11 : i64} {
  func.func @_mlp_kernel(%arg0: i32, %arg1: memref<8x128xf32, #tpu.memory_space<vmem>>, %arg2: memref<128x128xbf16, #tpu.memory_space<vmem>>, %arg3: memref<128x128xbf16, #tpu.memory_space<vmem>>, %arg4: memref<8x128xf32, #tpu.memory_space<vmem>>, %arg5: memref<8x128xf32, #tpu.memory_space<vmem>>) attributes {dimension_semantics = [#tpu.dimension_semantics<parallel>], iteration_bounds = array<i64: 2>, scalar_prefetch = 0 : i64, scratch_operands = 0 : i64, tpu.core_type = #tpu.core_type<tc>, window_params = [{transform_indices = @transform_0, window_bounds = array<i64: 8, 128>}, {pipeline_mode = #tpu.pipeline_mode<synchronous>, transform_indices = @transform_1, window_bounds = array<i64: 128, 128>}, {pipeline_mode = #tpu.pipeline_mode<synchronous>, transform_indices = @transform_2, window_bounds = array<i64: 128, 128>}, {pipeline_mode = #tpu.pipeline_mode<synchronous>, transform_indices = @transform_3, window_bounds = array<i64: 8, 128>}, {transform_indices = @transform_4, window_bounds = array<i64: 8, 128>}]} {
    %c0 = arith.constant 0 : index
    %c0_0 = arith.constant 0 : index
    %0 = vector.load %arg1[%c0, %c0_0] : memref<8x128xf32, #tpu.memory_space<vmem>>, vector<8x128xf32>
    %c0_1 = arith.constant 0 : index
    %c0_2 = arith.constant 0 : index
    %1 = vector.load %arg4[%c0_1, %c0_2] : memref<8x128xf32, #tpu.memory_space<vmem>>, vector<8x128xf32>
    %2 = vector.extract_strided_slice %1 {offsets = [0, 0], sizes = [1, 128], strides = [1, 1]} : vector<8x128xf32> to vector<1x128xf32>
    %3 = vector.extract_strided_slice %1 {offsets = [1, 0], sizes = [1, 128], strides = [1, 1]} : vector<8x128xf32> to vector<1x128xf32>
    %4 = vector.extract_strided_slice %1 {offsets = [2, 0], sizes = [1, 128], strides = [1, 1]} : vector<8x128xf32> to vector<1x128xf32>
    %5 = vector.extract_strided_slice %1 {offsets = [3, 0], sizes = [1, 128], strides = [1, 1]} : vector<8x128xf32> to vector<1x128xf32>
    %6 = arith.truncf %0 : vector<8x128xf32> to vector<8x128xbf16>
    %c0_3 = arith.constant 0 : index
    %c0_4 = arith.constant 0 : index
    %7 = vector.load %arg2[%c0_3, %c0_4] : memref<128x128xbf16, #tpu.memory_space<vmem>>, vector<128x128xbf16>
    %cst = arith.constant dense<0.000000e+00> : vector<8x128xf32>
    %8 = tpu.matmul %6, %7, %cst {dimension_numbers = #tpu.dot_dimension_numbers<[1], [0], [0], [1], [0, 0, 1, 1], [], []>} : vector<8x128xbf16>, vector<128x128xbf16>, vector<8x128xf32> -> vector<8x128xf32>
    %9 = vector.broadcast %2 : vector<1x128xf32> to vector<8x128xf32>
    %10 = arith.addf %8, %9 : vector<8x128xf32>
    %cst_5 = arith.constant 0.000000e+00 : f32
    %11 = vector.broadcast %cst_5 : f32 to vector<8x128xf32>
    %12 = arith.cmpf oge, %10, %11 : vector<8x128xf32>
    %13 = vector.broadcast %3 : vector<1x128xf32> to vector<8x128xf32>
    %14 = arith.mulf %13, %10 : vector<8x128xf32>
    %15 = arith.select %12, %10, %14 : vector<8x128xi1>, vector<8x128xf32>
    %16 = arith.truncf %15 : vector<8x128xf32> to vector<8x128xbf16>
    %c0_6 = arith.constant 0 : index
    %c0_7 = arith.constant 0 : index
    %17 = vector.load %arg3[%c0_6, %c0_7] : memref<128x128xbf16, #tpu.memory_space<vmem>>, vector<128x128xbf16>
    %cst_8 = arith.constant dense<0.000000e+00> : vector<8x128xf32>
    %18 = tpu.matmul %16, %17, %cst_8 {dimension_numbers = #tpu.dot_dimension_numbers<[1], [0], [0], [1], [0, 0, 1, 1], [], []>} : vector<8x128xbf16>, vector<128x128xbf16>, vector<8x128xf32> -> vector<8x128xf32>
    %19 = vector.broadcast %4 : vector<1x128xf32> to vector<8x128xf32>
    %20 = arith.addf %18, %19 : vector<8x128xf32>
    %cst_9 = arith.constant 0.000000e+00 : f32
    %21 = vector.broadcast %cst_9 : f32 to vector<8x128xf32>
    %22 = arith.cmpf oge, %20, %21 : vector<8x128xf32>
    %23 = vector.broadcast %5 : vector<1x128xf32> to vector<8x128xf32>
    %24 = arith.mulf %23, %20 : vector<8x128xf32>
    %25 = arith.select %22, %20, %24 : vector<8x128xi1>, vector<8x128xf32>
    %26 = arith.addf %25, %0 : vector<8x128xf32>
    %c0_10 = arith.constant 0 : index
    %c0_11 = arith.constant 0 : index
    %27 = vector.load %arg5[%c0_10, %c0_11] : memref<8x128xf32, #tpu.memory_space<vmem>>, vector<8x128xf32>
    tpu.vector_store %arg5[%c0_10, %c0_11], %26 {strides = array<i32>} : memref<8x128xf32, #tpu.memory_space<vmem>>, vector<8x128xf32>,
    return
  }
  func.func @transform_0(%arg0: i32) -> (i32, i32) {
    %c0_i32 = arith.constant 0 : i32
    %c0_i32_0 = arith.constant 0 : i32
    return %arg0, %c0_i32 : i32, i32
  }
  func.func @transform_1(%arg0: i32) -> (i32, i32) {
    %c0_i32 = arith.constant 0 : i32
    %c0_i32_0 = arith.constant 0 : i32
    %c0_i32_1 = arith.constant 0 : i32
    return %c0_i32, %c0_i32_0 : i32, i32
  }
  func.func @transform_2(%arg0: i32) -> (i32, i32) {
    %c0_i32 = arith.constant 0 : i32
    %c0_i32_0 = arith.constant 0 : i32
    %c0_i32_1 = arith.constant 0 : i32
    return %c0_i32, %c0_i32_0 : i32, i32
  }
  func.func @transform_3(%arg0: i32) -> (i32, i32) {
    %c0_i32 = arith.constant 0 : i32
    %c0_i32_0 = arith.constant 0 : i32
    %c0_i32_1 = arith.constant 0 : i32
    return %c0_i32, %c0_i32_0 : i32, i32
  }
  func.func @transform_4(%arg0: i32) -> (i32, i32) {
    %c0_i32 = arith.constant 0 : i32
    %c0_i32_0 = arith.constant 0 : i32
    return %arg0, %c0_i32 : i32, i32
  }
}

</mosaic_0001>

<bundles_post_ra>
// kernel: tpu_custom_call.1
= control target key start
LH: loop header
LB: loop body
LE: loop exit
PB: predicated region body
PF: predicated region fallthrough
CT: control target
= control target key end

     0   :  { %9 = vsyncpa [#allocation3], 0  ;;  %s1114_s0 = inlined_call_operand.hbm [shape: f32[16,128], index: 0, kind: input, shape index: {}]   ;;  %s1115_s1 = inlined_call_operand.hbm [shape: bf16[128,128], index: 1, kind: input, shape index: {}]   ;;  %s1116_s2 = inlined_call_operand.hbm [shape: bf16[128,128], index: 2, kind: input, shape index: {}]   ;;  %s1117_s3 = inlined_call_operand.hbm [shape: f32[8,128], index: 3, kind: input, shape index: {}]   ;;  %s1118_s4 = inlined_call_operand.hbm [shape: f32[16,128], index: 4, kind: output, shape index: {}]  }
   0x1   :  { %11 = vsyncpa [#allocation3 + $0x1], 0 }
   0x2   :  { %12 = vsyncpa [#allocation6], 0 }
   0x3   :  { %13 = vsyncpa [#allocation9], 0 }
   0x4   :  { %14 = vsyncpa [#allocation4], 0 }
   0x5   :  { %16 = vsyncpa [#allocation4 + $0x1], 0  ;;  %s951_s15 = smov 0   ;;  %s953_s16 = smov 0  }
   0x6   :  { %s955_s17 = smov 0   ;;  %s957_s18 = smov 0  }
   0x7 LB: > { %s153_s21 = sshll.u32 %s1115_s1, 4  ;;  %s975_s22 = sadd.s32 4294967295, %s919_s18   ;;  %s919_s18 = sphi %s957_s18, %s1129_s18   ;;  %s915_s17 = sphi %s955_s17, %s1128_s17   ;;  %s911_s16 = sphi %s953_s16, %s1127_s16   ;;  %s907_s15 = sphi %s951_s15, %s1126_s15   ;;  %s154_s21 = int_to_ptr.hbm [resolvable:$true] %s153_s21 }
   0x8   : > { %p549_p0 = scmp.ge.s32.totalorder %s919_s18, 1  ;;  %p43_p1 = scmp.eq.s32.totalorder %s975_s22, 0 }
   0x9   : > { %p142_p2 = scmp.lt.s32.totalorder %s919_s18, 3  ;;  %s921_s24 = smov [#allocation5]  }
   0xa   : > { %s155_s25 = sshll.u32 %s921_s24, 4  ;;  %s167_s28 = sshll.u32 %s1116_s2, 4  ;;  %s156_s25 = int_to_ptr.vmem [resolvable:$true] %s155_s25  ;;  %s168_s28 = int_to_ptr.hbm [resolvable:$true] %s167_s28 }
   0xb   : > { %p980_p3 = pnand %p549_p0, %p142_p2  ;;  %s182_s6 = sshll.u32 %s1117_s3, 4  ;;  %s183_s6 = int_to_ptr.hbm [resolvable:$true] %s182_s6 }
   0xc   : > { %s922_s7 = smov [#allocation7]   ;;  %s923_s9 = smov 64  }
   0xd   : > { %p662_p4 = pneg %p980_p3  ;;  %s169_s8 = sshll.u32 %s922_s7, 4  ;;  %s170_s8 = int_to_ptr.vmem [resolvable:$true] %s169_s8 }
   0xe   : > { %s924_s10 = smov 4   ;;  %s925_s11 = smov [#allocation8]  }
   0xf   : > { %p992_p6 = pnand %p662_p4, %p43_p1  ;;  %s184_s12 = sshll.u32 %s925_s11, 4  ;;  %s185_s12 = int_to_ptr.vmem [resolvable:$true] %s184_s12 }
  0x10   : > { %s548_s13 = sadd.s32 4294967294, %s919_s18   ;;  %s1007_s14 = sadd.s32 1, %s919_s18  }
  0x11   : > { %665 = dma.hbm_to_vmem [thread:$0]  (!%p992_p6), %s154_s21, 1024, %s156_s25, [#allocation6], %s923_s9, %s923_s9, %s924_s10  }
  0x12   : > { %668 = dma.hbm_to_vmem [thread:$0]  (!%p992_p6), %s168_s28, 1024, %s170_s8, [#allocation6], %s923_s9, %s923_s9, %s924_s10  }
  0x13   : > { %671 = dma.hbm_to_vmem [thread:$0]  (!%p992_p6), %s183_s6, 128, %s185_s12, [#allocation9]  }
  0x14   : > { %s29_s19 = sadd.s32 1, %s915_s17  ;;  %s26_s20 = ssub.s32 %s919_s18, %s1007_s14 }
  0x15   : > { %p36_p7 = scmp.ne.s32.totalorder %s915_s17, %s911_s16  ;;  %p27_p8 = scmp.eq.s32.totalorder %s26_s20, 0 }
  0x16   : > { %p37_p9 = scmp.eq.s32.totalorder %s919_s18, 0  ;;  %p42_p10 = scmp.ne.s32.totalorder %s911_s16, %s907_s15 }
  0x17   : > { %p129_p11 = scmp.eq.s32.totalorder %s975_s22, 1  ;;  %p135_p0 = scmp.eq.s32.totalorder %s548_s13, 1 }
  0x18   : > { %s1019_s21 = scalar_select %p27_p8, %s915_s17, %s29_s19  }
  0x19   : > { %p1023_p12 = por %p43_p1, %p42_p10  ;;  %p1027_p13 = por %p129_p11, %p36_p7 }
  0x1a   : > { %p38_p2 = por %p37_p9, %p36_p7  ;;  %s195_s26 = sand.u32 1, %s915_s17  }
  0x1b   : > { %p1032_p4 = por %p135_p0, %p42_p10  ;;  %p683_p6 = scmp.lt.s32.totalorder %s919_s18, 2 }
  0x1c   : > { %s554_s28 = sshll.u32 %s195_s26, 3  ;;  %s555_s29 = sshll.u32 %s919_s18, 3 }
  0x1d   : > { %s203_s6 = scalar_lea.hbm %s1114_s0, %s555_s29  ;;  %s199_s8 = scalar_lea.vmem [#allocation2], %s554_s28 }
  0x1e   : > { %s205_s7 = sshll.u32 %s203_s6, 4  ;;  %s207_s9 = sshll.u32 %s199_s8, 4  ;;  %s206_s7 = int_to_ptr.hbm [resolvable:$true] %s205_s7  ;;  %s208_s9 = int_to_ptr.vmem [resolvable:$true] %s207_s9 }
  0x1f   : > { %p1041_p8 = pnand %p683_p6, %p38_p2  ;;  %s196_s11 = scalar_lea.sflag [#allocation3], %s195_s26 }
  0x20   : > { %s815_s12 = sshra.s32 %s206_s7, 4  ;;  %s822_s28 = scalar_lea.hbm %s1114_s0, 16  ;;  %s816_s12 = int_to_ptr.hbm [resolvable:$true] %s815_s12 }
  0x21   : > { %s817_s13 = scalar_lea.hbm %s816_s12, 8  ;;  %p819_p9 = pneg %p1041_p8 }
  0x22   : > { %p818_p7 = scmp.ne.s32.totalorder %s816_s12, %s817_s13  ;;  %p823_p0 = scmp.lt.s32.totalorder %s816_s12, %s1114_s0 }
  0x23   : > { %p824_p2 = scmp.lt.s32.totalorder %s822_s28, %s817_s13 }
  0x24   : > { %p820_p10 = pnand %p819_p9, %p818_p7 }
  0x25   : > { %p825_p6 = por %p824_p2, %p823_p0 }
  0x26   : > { %p821_p11 = pneg %p820_p10 }
  0x28   : > { %p826_p5 = pnand %p825_p6, %p821_p11 }
  0x2a   : > { %829 = shalt.err (!%p826_p5)
}
  0x2b   : > { %675 = dma.hbm_to_vmem [thread:$0]  (!%p1041_p8), %s206_s7, 128, %s208_s9, %s196_s11  }
  0x2c   : > { %216 = sbr.rel (%p980_p3) target bundleno = 355 (0x163), region = 36  ;;  %s1058_s26 = sand.u32 (!%p980_p3), 1, %s911_s16  }
  0x2d   : > { %s557_s5 = sshll.u32 (!%p980_p3), %s1058_s26, 3  ;;  %s219_s6 = scalar_lea.sflag (!%p980_p3), [#allocation3], %s1058_s26 }
  0x2e   : > { %s1064_s8 = scalar_lea.vmem (!%p980_p3), [#allocation2], %s557_s5 }
  0x31   : > { %890 = dma.done.wait (%p1023_p12), %s219_s6, 128  }
  0x32   : > { %892 = vsyncadd (%p1023_p12), %s219_s6, 4294967168 }
  0x33   : > { %894 = dma.done.wait (%p43_p1), [#allocation6], 2048  }
  0x34   : > { %896 = vsyncadd (%p43_p1), [#allocation6], 4294965248 }
  0x35   : > { %898 = dma.done.wait (%p43_p1), [#allocation9], 128  }
  0x36   : > { %900 = vsyncadd (%p43_p1), [#allocation9], 4294967168  ;;  %v637_v0 = vld [vmem:[#allocation5 + $0x38] sm:$0xff]  ;;  %v636_v1 = vld [vmem:[#allocation5 + $0x30] sm:$0xff]  ;;  %s627_s23 = sshll.u32 %s975_s22, 3  ;;  %s262_s10 = scalar_lea.vmem [#allocation10], %s557_s5 }
  0x37   : > { %331 = vmatpush.bf16.msra.mxu0 %v637_v0  ;;  %v645_v2 = vld [vmem:[#allocation7 + $0x38] sm:$0xff]  ;;  %v644_v3 = vld [vmem:[#allocation7 + $0x30] sm:$0xff]  ;;  %v635_v4 = vld [vmem:[#allocation5 + $0x28] sm:$0xff]  ;;  %s444_s9 = scalar_lea.hbm %s1118_s4, %s627_s23  ;;  %s446_s11 = sshll.u32 %s262_s10, 4  ;;  %s447_s11 = int_to_ptr.vmem [resolvable:$true] %s446_s11 }
  0x38   : > { %414 = vmatpush.bf16.msra.mxu1 %v645_v2  ;;  %v643_v5 = vld [vmem:[#allocation7 + $0x28] sm:$0xff]  ;;  %v634_v6 = vld [vmem:[#allocation5 + $0x20] sm:$0xff]  ;;  %v633_v8 = vld [vmem:[#allocation5 + $0x18] sm:$0xff]  ;;  %s448_s12 = sshll.u32 %s444_s9, 4  ;;  %s434_s22 = scalar_lea.sflag [#allocation4], %s1058_s26  ;;  %s449_s12 = int_to_ptr.hbm [resolvable:$true] %s448_s12 }
  0x39   : > { %v642_v7 = vld [vmem:[#allocation7 + $0x20] sm:$0xff]  ;;  %v641_v9 = vld [vmem:[#allocation7 + $0x18] sm:$0xff]  ;;  %v632_v10 = vld [vmem:[#allocation5 + $0x10] sm:$0xff]  ;;  %s859_s13 = sshra.s32 %s449_s12, 4  ;;  %s865_s29 = scalar_lea.hbm %s1118_s4, 16  ;;  %s860_s13 = int_to_ptr.hbm [resolvable:$true] %s859_s13 }
  0x3a   : > { %v640_v11 = vld [vmem:[#allocation7 + $0x10] sm:$0xff]  ;;  %v631_v12 = vld [vmem:[#allocation5 + $0x8] sm:$0xff]  ;;  %v630_v13 = vld [vmem:[#allocation5] sm:$0xff]  ;;  %s861_s19 = scalar_lea.hbm %s860_s13, 8  ;;  %p866_p12 = scmp.lt.s32.totalorder %s860_s13, %s1118_s4 }
  0x3b   : > { %332 = vmatpush.bf16.msra.mxu0 %v636_v1  ;;  %v263_v14 = vld [vmem:[%s1064_s8] sm:$0xff]  ;;  %v639_v16 = vld [vmem:[#allocation7 + $0x8] sm:$0xff]  ;;  %v638_v17 = vld [vmem:[#allocation7] sm:$0xff]  ;;  %p862_p1 = scmp.ne.s32.totalorder %s860_s13, %s861_s19  ;;  %p867_p8 = scmp.lt.s32.totalorder %s865_s29, %s861_s19 }
  0x3c   : > { %415 = vmatpush.bf16.msra.mxu1 %v644_v3  ;;  %v265_v15 = vpack.c.bf16 %v263_v14, %v263_v14  ;;  %v264_v18 = vld [vmem:[#allocation8] sm:$0xff] }
  0x3d   : > { %v282_v19 = vperm.slane %v264_v18, 0  ;;  %v345_v20 = vperm.slane %v264_v18, 1  ;;  %v365_v27 = vperm.slane %v264_v18, 2  ;;  %v428_v28 = vperm.slane %v264_v18, 3  ;;  %p863_p3 = pnand %p862_p1, %p1027_p13  ;;  %p868_p7 = por %p867_p8, %p866_p12 }
  0x3f   : > { %333 = vmatpush.bf16.msra.mxu0 %v635_v4  ;;  %p864_p5 = pneg %p863_p3 }
  0x40   : > { %416 = vmatpush.bf16.msra.mxu1 %v643_v5 }
  0x41   : > { %p869_p9 = pnand %p868_p7, %p864_p5 }
  0x43   : > { %334 = vmatpush.bf16.msra.mxu0 %v634_v6 }
  0x44   : > { %417 = vmatpush.bf16.msra.mxu1 %v642_v7 }
  0x47   : > { %335 = vmatpush.bf16.msra.mxu0 %v633_v8 }
  0x48   : > { %418 = vmatpush.bf16.msra.mxu1 %v641_v9 }
  0x4b   : > { %336 = vmatpush.bf16.msra.mxu0 %v632_v10 }
  0x4c   : > { %419 = vmatpush.bf16.msra.mxu1 %v640_v11 }
  0x4f   : > { %337 = vmatpush.bf16.msra.mxu0 %v631_v12 }
  0x50   : > { %420 = vmatpush.bf16.msra.mxu1 %v639_v16 }
  0x53   : > { %338 = vmatpush.bf16.msra.mxu0 %v630_v13 }
  0x54   : > { %421 = vmatpush.bf16.msra.mxu1 %v638_v17 }
  0x56   : > { %339 = vmatmul.bf16.vlgmr.msra.gmra.mxu0 %v265_v15 }
  0xd3   : > { %v340_v21 = vpop.f32.mrf.mxu0 }
  0xd4   : > { %v341_v22 = vadd.f32 %v340_v21, %v282_v19 }
  0xd6   : > { %v346_v23 = vmul.f32 %v345_v20, %v341_v22  ;;  %vm344_vm0 = vcmp.ge.f32.partialorder %v341_v22, 0.0 }
  0xd8   : > { %v347_v24 = vsel %vm344_vm0, %v341_v22, %v346_v23 }
  0xd9   : > { %v348_v25 = vpack.c.bf16 %v347_v24, %v347_v24 }
  0xdb   : > { %v342_v26 = vpop.f32.mrf.mxu0  ;;  %422 = vmatmul.bf16.vlgmr.msra.gmra.mxu1 %v348_v25 }
 0x158   : > { %v423_v29 = vpop.f32.mrf.mxu1 }
 0x159   : > { %v424_v30 = vadd.f32 %v423_v29, %v365_v27 }
 0x15b   : > { %vm427_vm1 = vcmp.ge.f32.partialorder %v424_v30, 0.0  ;;  %v429_v31 = vmul.f32 %v428_v28, %v424_v30 }
 0x15d   : > { %v430_v32 = vsel %vm427_vm1, %v424_v30, %v429_v31 }
 0x15e   : > { %v431_v33 = vadd.f32 %v430_v32, %v263_v14 }
 0x160   : > { %v425_v34 = vpop.f32.mrf.mxu1  ;;  %432 = vst [vmem:[%s262_s10] sm:$0xff] %v431_v33 }
 0x161   : > { %872 = shalt.err (!%p869_p9)
}
 0x162   : > { %660 = dma.vmem_to_hbm [thread:$0]  (%p1027_p13), %s447_s11, 128, %s449_s12, %s434_s22  }
 0x163 PF: > { %s460_s26 = sand.u32 1, %s907_s15   ;;  %p1125_p10 = scmp.ge.s32.totalorder %s919_s18, 2 }
 0x164   : > { %s461_s6 = scalar_lea.sflag [#allocation4], %s460_s26 }
 0x165   : > { %p677_p11 = pnand %p1125_p10, %p1032_p4 }
 0x167   : > { %p678_p0 = pneg %p677_p11 }
 0x169   : > { %902 = dma.done.wait (%p678_p0), %s461_s6, 128  }
 0x16a   : > { %904 = vsyncadd (%p678_p0), %s461_s6, 4294967168  ;;  %p19_p2 = scmp.ge.s32.totalorder %s1007_s14, 4   ;;  %s1126_s15 = smov %s911_s16 }
 0x16b   : > { %s1127_s16 = smov %s915_s17  ;;  %s1128_s17 = smov %s1019_s21 }
 0x16c   : > { %s1129_s18 = smov %s1007_s14  ;;  %21 = sbr.rel (!%p19_p2) target bundleno = 7 (0x7), region = 93 }
 0x171   :  { %467 = vsyncpa [#allocation3], 1 }
 0x172   :  { %469 = vsyncpa [#allocation3 + $0x1], 1 }
 0x173   :  { %470 = vsyncpa [#allocation6], 1 }
 0x174   :  { %471 = vsyncpa [#allocation9], 1 }
 0x175   :  { %472 = vsyncpa [#allocation4], 1 }
 0x176   :  { %474 = vsyncpa [#allocation4 + $0x1], 1 }

</bundles_post_ra>
